<compile_context>
chip_gen: v5e
topology: v5e:2x2
jax: 0.10.0
libtpu: 0.0.40
codegen_flags: <defaults>
</compile_context>

<pallas_src>
import functools

import jax
import jax.numpy as jnp
from jax.experimental import pallas as pl
from jax.experimental.pallas import tpu as pltpu

BN_EPS = 1e-5
_LANE = 128
_VMEM_LIMIT_BYTES = 48 * 1024 * 1024   # <= 64 MiB physical on v7x, << 128 MiB v5e/v6e
_VMEM_BUDGET_BYTES = 36 * 1024 * 1024  # target per-pass working set for tile sizing
_FUSED_BYTES_LIMIT = 8 * 1024 * 1024   # threshold for the single-call fast path


def _round_up(x, m):
    return (x + m - 1) // m * m


def _pad2d(a, shape, dtype):
    a = jnp.asarray(a, dtype)
    if a.shape == shape:
        return a
    return jnp.zeros(shape, dtype).at[: a.shape[0], : a.shape[1]].set(a)


def _resident_spec(block_shape):
    """VMEM-resident operand (constant index map); single-buffered when supported."""
    index_map = lambda i: (0,) * len(block_shape)
    try:
        return pl.BlockSpec(block_shape, index_map, pipeline_mode=pl.Buffered(1))
    except (TypeError, AttributeError):   # older jax without pipeline_mode/Buffered
        return pl.BlockSpec(block_shape, index_map)


# ---------------------------------------------------------------------------
# Streaming pass 1: h = fc1(x) tile (bf16), per-tile partial BN statistics.
# ---------------------------------------------------------------------------
def _fc1_stats_kernel(x_ref, w1_ref, b1_ref, h_ref, stats_ref):
    # hc = x @ w1 (bf16 operands, f32 MXU accumulation).  Padded batch rows of
    # x are zero => hc is exactly zero there, so the sums need no batch mask.
    # Stats are accumulated on hc (shifted by b1 ~ the batch mean) to avoid
    # E[h^2] - E[h]^2 catastrophic cancellation.
    hc = jnp.dot(x_ref[...], w1_ref[...], preferred_element_type=jnp.float32)
    h_ref[...] = (hc + b1_ref[...]).astype(h_ref.dtype)
    s1 = jnp.sum(hc, axis=0, keepdims=True)
    s2 = jnp.sum(hc * hc, axis=0, keepdims=True)
    stats_ref[0] = jnp.concatenate([s1, s2], axis=0)          # (2, Hp) partial


# ---------------------------------------------------------------------------
# Streaming pass 2: BN finalize (in-kernel) + normalize (one FMA) + fc2.
# ---------------------------------------------------------------------------
def _bn_fc2_kernel(h_ref, stats_ref, b1_ref, gamma_ref, beta_ref, w2_ref, b2_ref,
                   o_ref, *, inv_b, eps, mm_dtype):
    s1 = stats_ref[0:1, :] * inv_b             # E[h - b1]
    s2 = stats_ref[1:2, :] * inv_b             # E[(h - b1)^2]
    var = jnp.maximum(s2 - s1 * s1, 0.0)       # biased batch variance
    scale = gamma_ref[...] * jax.lax.rsqrt(var + eps)
    shift = beta_ref[...] - (b1_ref[...] + s1) * scale
    h_bn = h_ref[...].astype(jnp.float32) * scale + shift
    out = jnp.dot(h_bn.astype(mm_dtype), w2_ref[...],
                  preferred_element_type=jnp.float32)
    o_ref[...] = out + b2_ref[...]


# ---------------------------------------------------------------------------
# Small-problem fast path: fc1 + stats + BN + fc2 in one kernel, h never hits HBM.
# ---------------------------------------------------------------------------
def _fused_kernel(x_ref, w1_ref, b1_ref, gamma_ref, beta_ref, w2_ref, b2_ref,
                  o_ref, *, inv_b, eps, mm_dtype):
    hc = jnp.dot(x_ref[...], w1_ref[...], preferred_element_type=jnp.float32)
    mean_c = jnp.sum(hc, axis=0, keepdims=True) * inv_b       # padded rows are 0
    ex2 = jnp.sum(hc * hc, axis=0, keepdims=True) * inv_b
    var = jnp.maximum(ex2 - mean_c * mean_c, 0.0)
    scale = gamma_ref[...] * jax.lax.rsqrt(var + eps)
    shift = beta_ref[...] - (b1_ref[...] + mean_c) * scale
    h = hc + b1_ref[...]
    h_bn = (h * scale + shift).astype(mm_dtype)
    o_ref[...] = jnp.dot(h_bn, w2_ref[...],
                         preferred_element_type=jnp.float32) + b2_ref[...]


def prepare_params(w1, b1, gamma, beta, w2, b2, *, use_bf16=True):
    """Pad / cast the parameters once (hoisted out of the per-forward path)."""
    d_in, h = w1.shape
    d_out = w2.shape[1]
    mm_dtype = jnp.bfloat16 if use_bf16 else jnp.float32
    dp_in, hp, dp_out = (_round_up(d, _LANE) for d in (d_in, h, d_out))
    return dict(
        d_in=d_in, h=h, d_out=d_out, dp_in=dp_in, hp=hp, dp_out=dp_out,
        mm_dtype=mm_dtype,
        w1=_pad2d(w1, (dp_in, hp), mm_dtype),
        b1=_pad2d(jnp.reshape(b1, (1, -1)), (1, hp), jnp.float32),
        gamma=_pad2d(jnp.reshape(gamma, (1, -1)), (1, hp), jnp.float32),
        beta=_pad2d(jnp.reshape(beta, (1, -1)), (1, hp), jnp.float32),
        w2=_pad2d(w2, (hp, dp_out), mm_dtype),
        b2=_pad2d(jnp.reshape(b2, (1, -1)), (1, dp_out), jnp.float32),
    )


def bn_two_layer_nn(params, x, *, block_b=512, eps=BN_EPS, allow_fused=True):
    """x: [B, D_in] -> [B, D_out] = fc2(BatchNorm1d(fc1(x))) (training-mode BN)."""
    B, d_in = x.shape
    assert d_in == params["d_in"]
    dp_in, hp, dp_out = params["dp_in"], params["hp"], params["dp_out"]
    mm_dtype = params["mm_dtype"]
    mm_bytes = jnp.dtype(mm_dtype).itemsize
    row = 16 if mm_bytes == 2 else 8          # bf16 packs 16 rows per vreg
    inv_b = float(1.0 / B)

    # ---- small-problem fast path: single kernel, everything in VMEM --------
    fused_bytes = (_round_up(B, row) * (dp_in * mm_bytes + 3 * hp * 4 + dp_out * 4)
                   + dp_in * hp * mm_bytes + hp * dp_out * mm_bytes
                   + 6 * hp * 4 + dp_out * 4)
    if allow_fused and fused_bytes <= _FUSED_BYTES_LIMIT:
        b_pad = _round_up(B, row)
        xp = _pad2d(x, (b_pad, dp_in), mm_dtype)
        out = pl.pallas_call(
            functools.partial(_fused_kernel, inv_b=inv_b, eps=eps, mm_dtype=mm_dtype),
            out_shape=jax.ShapeDtypeStruct((b_pad, dp_out), jnp.float32),
            compiler_params=pltpu.CompilerParams(vmem_limit_bytes=_VMEM_LIMIT_BYTES),
        )(xp, params["w1"], params["b1"], params["gamma"], params["beta"],
          params["w2"], params["b2"])
        return out[:B, : params["d_out"]]

    # ---- streaming path: batch-tiled, two megacore-parallel passes ---------
    # Largest batch tile whose per-pass working set fits the VMEM budget.
    tb = _round_up(min(block_b, max(B, row)), row)

    def _footprint(t):
        p1 = (2 * t * dp_in * mm_bytes + dp_in * hp * mm_bytes + hp * 4
              + 2 * t * hp * mm_bytes + 2 * 2 * hp * 4)
        p2 = (2 * t * hp * mm_bytes + (2 + 3) * hp * 4
              + hp * dp_out * mm_bytes + dp_out * 4 + 2 * t * dp_out * 4)
        return max(p1, p2)

    while tb > row and _footprint(tb) > _VMEM_BUDGET_BYTES:
        tb = _round_up(tb // 2, row)
    b_pad = _round_up(B, tb)
    n_tiles = b_pad // tb
    # TODO(synk): for dp_in/hp >= ~4K the fully-resident-weight design should
    # switch to K/N-tiled weights (extra reduction grid axis) to fit v7x's 64 MiB.

    xp = _pad2d(x, (b_pad, dp_in), mm_dtype)
    cparams = pltpu.CompilerParams(dimension_semantics=("parallel",),
                                   vmem_limit_bytes=_VMEM_LIMIT_BYTES)

    # pass 1: h tiles (bf16) + per-tile partial stats (no resident accumulator)
    h_pad, stats_parts = pl.pallas_call(
        _fc1_stats_kernel,
        out_shape=(jax.ShapeDtypeStruct((b_pad, hp), mm_dtype),
                   jax.ShapeDtypeStruct((n_tiles, 2, hp), jnp.float32)),
        grid=(n_tiles,),
        in_specs=[
            pl.BlockSpec((tb, dp_in), lambda i: (i, 0)),      # x: streamed
            _resident_spec((dp_in, hp)),                      # w1: resident
            _resident_spec((1, hp)),                          # b1: resident
        ],
        out_specs=(
            pl.BlockSpec((tb, hp), lambda i: (i, 0)),         # h: streamed
            pl.BlockSpec((1, 2, hp), lambda i: (i, 0, 0)),    # per-tile stats
        ),
        compiler_params=cparams,
    )(xp, params["w1"], params["b1"])

    # tiny cross-tile reduction; scale/shift finalize is fused into pass 2
    stats = jnp.sum(stats_parts, axis=0)                      # (2, Hp) f32

    # pass 2: BN (finalize + FMA) + fc2
    out_pad = pl.pallas_call(
        functools.partial(_bn_fc2_kernel, inv_b=inv_b, eps=eps, mm_dtype=mm_dtype),
        out_shape=jax.ShapeDtypeStruct((b_pad, dp_out), jnp.float32),
        grid=(n_tiles,),
        in_specs=[
            pl.BlockSpec((tb, hp), lambda i: (i, 0)),         # h: streamed
            _resident_spec((2, hp)),                          # stats
            _resident_spec((1, hp)),                          # b1
            _resident_spec((1, hp)),                          # gamma
            _resident_spec((1, hp)),                          # beta
            _resident_spec((hp, dp_out)),                     # w2
            _resident_spec((1, dp_out)),                      # b2
        ],
        out_specs=pl.BlockSpec((tb, dp_out), lambda i: (i, 0)),
        compiler_params=cparams,
    )(h_pad, stats, params["b1"], params["gamma"], params["beta"],
      params["w2"], params["b2"])

    return out_pad[:B, : params["d_out"]]


def reference(x, w1, b1, gamma, beta, w2, b2, *, use_bf16=True, eps=BN_EPS):
    """Pure-JAX reference with the same MXU precision choices (bf16 in, f32 acc)."""
    mm = jnp.bfloat16 if use_bf16 else jnp.float32
    h = jnp.dot(x.astype(mm), w1.astype(mm), preferred_element_type=jnp.float32) + b1
    mean = jnp.mean(h, axis=0, keepdims=True)
    var = jnp.mean(jnp.square(h - mean), axis=0, keepdims=True)   # biased
    h_bn = (h - mean) * jax.lax.rsqrt(var + eps) * gamma + beta
    return jnp.dot(h_bn.astype(mm), w2.astype(mm),
                   preferred_element_type=jnp.float32) + b2


if __name__ == "__main__":
    # Small two-layer MLP head.  B is not a multiple of the batch tile and the
    # feature dims are not multiples of 128 so the padding paths are exercised.
    B, D_IN, H, D_OUT = 200, 120, 100, 10

    key = jax.random.PRNGKey(0)
    kx, k1, kb1, k2, kb2 = jax.random.split(key, 5)

    x = jax.random.normal(kx, (B, D_IN), dtype=jnp.float32)

    lim1 = 1.0 / (D_IN ** 0.5)
    w1 = jax.random.uniform(k1, (D_IN, H), jnp.float32, -lim1, lim1)
    b1 = jax.random.uniform(kb1, (1, H), jnp.float32, -lim1, lim1)

    lim2 = 1.0 / (H ** 0.5)
    w2 = jax.random.uniform(k2, (H, D_OUT), jnp.float32, -lim2, lim2)
    b2 = jax.random.uniform(kb2, (1, D_OUT), jnp.float32, -lim2, lim2)

    gamma = jnp.ones((1, H), jnp.float32)   # BatchNorm1d default affine init
    beta = jnp.zeros((1, H), jnp.float32)

    params = prepare_params(w1, b1, gamma, beta, w2, b2)

    fwd_fused = jax.jit(lambda xv: bn_two_layer_nn(params, xv))                    # fast path
    fwd_stream = jax.jit(lambda xv: bn_two_layer_nn(params, xv, block_b=64,        # streaming
                                                    allow_fused=False))

    out_fused = jax.block_until_ready(fwd_fused(x))
    out_stream = jax.block_until_ready(fwd_stream(x))

    ref = reference(x, w1, b1, gamma, beta, w2, b2)
    assert out_fused.shape == (B, D_OUT)
    assert out_stream.shape == (B, D_OUT)
    assert jnp.allclose(out_fused, ref, atol=1e-2, rtol=1e-2), "fused path mismatch"
    assert jnp.allclose(out_stream, ref, atol=1e-2, rtol=1e-2), "streaming path mismatch"

    print("KERNEL_OK")
</pallas_src>

<mosaic_0001>
module attributes {stable_mosaic.version = 11 : i64} {
  func.func @_fused_kernel(%arg0: memref<208x128xbf16, #tpu.memory_space<vmem>>, %arg1: memref<128x128xbf16, #tpu.memory_space<vmem>>, %arg2: memref<1x128xf32, #tpu.memory_space<vmem>>, %arg3: memref<1x128xf32, #tpu.memory_space<vmem>>, %arg4: memref<1x128xf32, #tpu.memory_space<vmem>>, %arg5: memref<128x128xbf16, #tpu.memory_space<vmem>>, %arg6: memref<1x128xf32, #tpu.memory_space<vmem>>, %arg7: memref<208x128xf32, #tpu.memory_space<vmem>>) attributes {dimension_semantics = [], scalar_prefetch = 0 : i64, scratch_operands = 0 : i64, tpu.core_type = #tpu.core_type<tc>} {
    %c0 = arith.constant 0 : index
    %c0_0 = arith.constant 0 : index
    %0 = vector.load %arg0[%c0, %c0_0] : memref<208x128xbf16, #tpu.memory_space<vmem>>, vector<208x128xbf16>
    %c0_1 = arith.constant 0 : index
    %c0_2 = arith.constant 0 : index
    %1 = vector.load %arg1[%c0_1, %c0_2] : memref<128x128xbf16, #tpu.memory_space<vmem>>, vector<128x128xbf16>
    %cst = arith.constant dense<0.000000e+00> : vector<208x128xf32>
    %2 = tpu.matmul %0, %1, %cst {dimension_numbers = #tpu.dot_dimension_numbers<[1], [0], [0], [1], [0, 0, 1, 1], [], []>} : vector<208x128xbf16>, vector<128x128xbf16>, vector<208x128xf32> -> vector<208x128xf32>
    %cst_3 = arith.constant dense<0.000000e+00> : vector<128xf32>
    %3 = vector.multi_reduction <add>, %2, %cst_3 [0] : vector<208x128xf32> to vector<128xf32>
    %4 = vector.shape_cast %3 : vector<128xf32> to vector<1x128xf32>
    %cst_4 = arith.constant 5.000000e-03 : f32
    %5 = vector.broadcast %cst_4 : f32 to vector<1x128xf32>
    %6 = arith.mulf %4, %5 : vector<1x128xf32>
    %7 = arith.mulf %2, %2 : vector<208x128xf32>
    %cst_5 = arith.constant dense<0.000000e+00> : vector<128xf32>
    %8 = vector.multi_reduction <add>, %7, %cst_5 [0] : vector<208x128xf32> to vector<128xf32>
    %9 = vector.shape_cast %8 : vector<128xf32> to vector<1x128xf32>
    %cst_6 = arith.constant 5.000000e-03 : f32
    %10 = vector.broadcast %cst_6 : f32 to vector<1x128xf32>
    %11 = arith.mulf %9, %10 : vector<1x128xf32>
    %12 = arith.mulf %6, %6 : vector<1x128xf32>
    %13 = arith.subf %11, %12 : vector<1x128xf32>
    %cst_7 = arith.constant 0.000000e+00 : f32
    %14 = vector.broadcast %cst_7 : f32 to vector<1x128xf32>
    %15 = arith.maximumf %13, %14 : vector<1x128xf32>
    %c0_8 = arith.constant 0 : index
    %c0_9 = arith.constant 0 : index
    %16 = vector.load %arg3[%c0_8, %c0_9] : memref<1x128xf32, #tpu.memory_space<vmem>>, vector<1x128xf32>
    %cst_10 = arith.constant 9.99999974E-6 : f32
    %17 = vector.broadcast %cst_10 : f32 to vector<1x128xf32>
    %18 = arith.addf %15, %17 : vector<1x128xf32>
    %19 = math.rsqrt %18 : vector<1x128xf32>
    %20 = arith.mulf %16, %19 : vector<1x128xf32>
    %c0_11 = arith.constant 0 : index
    %c0_12 = arith.constant 0 : index
    %21 = vector.load %arg4[%c0_11, %c0_12] : memref<1x128xf32, #tpu.memory_space<vmem>>, vector<1x128xf32>
    %c0_13 = arith.constant 0 : index
    %c0_14 = arith.constant 0 : index
    %22 = vector.load %arg2[%c0_13, %c0_14] : memref<1x128xf32, #tpu.memory_space<vmem>>, vector<1x128xf32>
    %23 = arith.addf %22, %6 : vector<1x128xf32>
    %24 = arith.mulf %23, %20 : vector<1x128xf32>
    %25 = arith.subf %21, %24 : vector<1x128xf32>
    %c0_15 = arith.constant 0 : index
    %c0_16 = arith.constant 0 : index
    %26 = vector.load %arg2[%c0_15, %c0_16] : memref<1x128xf32, #tpu.memory_space<vmem>>, vector<1x128xf32>
    %27 = vector.broadcast %26 : vector<1x128xf32> to vector<208x128xf32>
    %28 = arith.addf %2, %27 : vector<208x128xf32>
    %29 = vector.broadcast %20 : vector<1x128xf32> to vector<208x128xf32>
    %30 = arith.mulf %28, %29 : vector<208x128xf32>
    %31 = vector.broadcast %25 : vector<1x128xf32> to vector<208x128xf32>
    %32 = arith.addf %30, %31 : vector<208x128xf32>
    %33 = arith.truncf %32 : vector<208x128xf32> to vector<208x128xbf16>
    %c0_17 = arith.constant 0 : index
    %c0_18 = arith.constant 0 : index
    %34 = vector.load %arg5[%c0_17, %c0_18] : memref<128x128xbf16, #tpu.memory_space<vmem>>, vector<128x128xbf16>
    %cst_19 = arith.constant dense<0.000000e+00> : vector<208x128xf32>
    %35 = tpu.matmul %33, %34, %cst_19 {dimension_numbers = #tpu.dot_dimension_numbers<[1], [0], [0], [1], [0, 0, 1, 1], [], []>} : vector<208x128xbf16>, vector<128x128xbf16>, vector<208x128xf32> -> vector<208x128xf32>
    %c0_20 = arith.constant 0 : index
    %c0_21 = arith.constant 0 : index
    %36 = vector.load %arg6[%c0_20, %c0_21] : memref<1x128xf32, #tpu.memory_space<vmem>>, vector<1x128xf32>
    %37 = vector.broadcast %36 : vector<1x128xf32> to vector<208x128xf32>
    %38 = arith.addf %35, %37 : vector<208x128xf32>
    %c0_22 = arith.constant 0 : index
    %c0_23 = arith.constant 0 : index
    %39 = vector.load %arg7[%c0_22, %c0_23] : memref<208x128xf32, #tpu.memory_space<vmem>>, vector<208x128xf32>
    tpu.vector_store %arg7[%c0_22, %c0_23], %38 {strides = array<i32>} : memref<208x128xf32, #tpu.memory_space<vmem>>, vector<208x128xf32>,
    return
  }
}

</mosaic_0001>

<bundles_post_ra>
// kernel: _lambda_.1
= control target key start
LH: loop header
LB: loop body
LE: loop exit
PB: predicated region body
PF: predicated region fallthrough
CT: control target
= control target key end

     0   :  { %s1255_s1 = inlined_call_operand.vmem [shape: bf16[128,128], index: 1, kind: input, shape index: {}]   ;;  %s1256_s0 = inlined_call_operand.vmem [shape: bf16[208,128], index: 0, kind: input, shape index: {}]   ;;  %s1257_s5 = inlined_call_operand.vmem [shape: bf16[128,128], index: 5, kind: input, shape index: {}]   ;;  %s1258_s6 = inlined_call_operand.vmem [shape: f32[1,128], index: 6, kind: input, shape index: {}]   ;;  %s1259_s2 = inlined_call_operand.vmem [shape: f32[1,128], index: 2, kind: input, shape index: {}]   ;;  %s1260_s3 = inlined_call_operand.vmem [shape: f32[1,128], index: 3, kind: input, shape index: {}]   ;;  %s1261_s4 = inlined_call_operand.vmem [shape: f32[1,128], index: 4, kind: input, shape index: {}]   ;;  %s1262_s7 = inlined_call_operand.vmem [shape: f32[208,128], index: 7, kind: output, shape index: {}]  }
   0x1   :  { %v787_v0 = vld [vmem:[%s1255_s1 + $0x38] sm:$0xff]  ;;  %v786_v1 = vld [vmem:[%s1255_s1 + $0x30] sm:$0xff]  ;;  %v785_v2 = vld [vmem:[%s1255_s1 + $0x28] sm:$0xff] }
   0x2   :  { %194 = vmatpush.bf16.msra.mxu0 %v787_v0  ;;  %796 = vmatpush.bf16.msra.mxu2 %v787_v0  ;;  %v784_v3 = vld [vmem:[%s1255_s1 + $0x20] sm:$0xff]  ;;  %v783_v4 = vld [vmem:[%s1255_s1 + $0x18] sm:$0xff]  ;;  %v782_v5 = vld [vmem:[%s1255_s1 + $0x10] sm:$0xff] }
   0x3   :  { %v781_v6 = vld [vmem:[%s1255_s1 + $0x8] sm:$0xff]  ;;  %v780_v7 = vld [vmem:[%s1255_s1] sm:$0xff]  ;;  %v773_v9 = vld [vmem:[%s1256_s0 + $0x30] sm:$0xff] }
   0x4   :  { %v767_v8 = vld [vmem:[%s1256_s0] sm:$0xff]  ;;  %v768_v10 = vld [vmem:[%s1256_s0 + $0x8] sm:$0xff]  ;;  %v774_v11 = vld [vmem:[%s1256_s0 + $0x38] sm:$0xff] }
   0x5   :  { %v769_v12 = vld [vmem:[%s1256_s0 + $0x10] sm:$0xff]  ;;  %v775_v13 = vld [vmem:[%s1256_s0 + $0x40] sm:$0xff]  ;;  %v770_v14 = vld [vmem:[%s1256_s0 + $0x18] sm:$0xff] }
   0x6   :  { %195 = vmatpush.bf16.msra.mxu0 %v786_v1  ;;  %797 = vmatpush.bf16.msra.mxu2 %v786_v1  ;;  %v776_v15 = vld [vmem:[%s1256_s0 + $0x48] sm:$0xff]  ;;  %v771_v16 = vld [vmem:[%s1256_s0 + $0x20] sm:$0xff]  ;;  %v777_v17 = vld [vmem:[%s1256_s0 + $0x50] sm:$0xff] }
   0x7   :  { %v772_v18 = vld [vmem:[%s1256_s0 + $0x28] sm:$0xff]  ;;  %v778_v19 = vld [vmem:[%s1256_s0 + $0x58] sm:$0xff]  ;;  %v779_v20 = vld [vmem:[%s1256_s0 + $0x60] sm:$0xff] }
   0xa   :  { %196 = vmatpush.bf16.msra.mxu0 %v785_v2  ;;  %798 = vmatpush.bf16.msra.mxu2 %v785_v2 }
   0xe   :  { %197 = vmatpush.bf16.msra.mxu0 %v784_v3  ;;  %799 = vmatpush.bf16.msra.mxu2 %v784_v3 }
  0x12   :  { %198 = vmatpush.bf16.msra.mxu0 %v783_v4  ;;  %800 = vmatpush.bf16.msra.mxu2 %v783_v4 }
  0x16   :  { %199 = vmatpush.bf16.msra.mxu0 %v782_v5  ;;  %801 = vmatpush.bf16.msra.mxu2 %v782_v5 }
  0x1a   :  { %200 = vmatpush.bf16.msra.mxu0 %v781_v6  ;;  %802 = vmatpush.bf16.msra.mxu2 %v781_v6 }
  0x1e   :  { %201 = vmatpush.bf16.msra.mxu0 %v780_v7  ;;  %803 = vmatpush.bf16.msra.mxu2 %v780_v7 }
  0x21   :  { %202 = vmatmul.bf16.vlgmr.msra.gmra.mxu0 %v767_v8  ;;  %232 = vmatmul.bf16.vlgmr.msra.gmra.mxu2 %v773_v9 }
  0x31   :  { %207 = vmatmul.bf16.gmra.mxu0 %v768_v10  ;;  %237 = vmatmul.bf16.gmra.mxu2 %v774_v11 }
  0x41   :  { %212 = vmatmul.bf16.gmra.mxu0 %v769_v12  ;;  %242 = vmatmul.bf16.gmra.mxu2 %v775_v13 }
  0x51   :  { %217 = vmatmul.bf16.gmra.mxu0 %v770_v14  ;;  %247 = vmatmul.bf16.gmra.mxu2 %v776_v15 }
  0x61   :  { %222 = vmatmul.bf16.gmra.mxu0 %v771_v16  ;;  %252 = vmatmul.bf16.gmra.mxu2 %v777_v17 }
  0x71   :  { %227 = vmatmul.bf16.gmra.mxu0 %v772_v18  ;;  %257 = vmatmul.bf16.gmra.mxu2 %v778_v19 }
  0x81   :  { %262 = vmatmul.bf16.gmra.mxu2 %v779_v20 }
  0x9e   :  { %v919_v21 = vpop.f32.mrf.mxu0 }
  0x9f   :  { %v300_v39 = vmul.f32 %v919_v21, %v919_v21 }
  0xa4   :  { %v921_v22 = vpop.f32.mrf.mxu2 }
  0xa5   :  { %v312_v13 = vmul.f32 %v921_v22, %v921_v22 }
  0xa6   :  { %v923_v23 = vpop.f32.mrf.mxu0 }
  0xa7   :  { %v301_v38 = vmul.f32 %v923_v23, %v923_v23  ;;  %v268_v40 = vadd.f32 %v923_v23, %v919_v21 }
  0xa9   :  { %v326_v43 = vadd.f32 %v301_v38, %v300_v39 }
  0xac   :  { %v925_v24 = vpop.f32.mrf.mxu2 }
  0xad   :  { %v313_v16 = vmul.f32 %v925_v24, %v925_v24 }
  0xae   :  { %v927_v25 = vpop.f32.mrf.mxu0 }
  0xaf   :  { %v302_v41 = vmul.f32 %v927_v25, %v927_v25  ;;  %v269_v44 = vadd.f32 %v268_v40, %v927_v25 }
  0xb1   :  { %v327_v47 = vadd.f32 %v326_v43, %v302_v41 }
  0xb4   :  { %v929_v26 = vpop.f32.mrf.mxu2 }
  0xb5   :  { %v314_v20 = vmul.f32 %v929_v26, %v929_v26 }
  0xb6   :  { %v931_v27 = vpop.f32.mrf.mxu0 }
  0xb7   :  { %v303_v45 = vmul.f32 %v931_v27, %v931_v27  ;;  %v270_v48 = vadd.f32 %v269_v44, %v931_v27 }
  0xb9   :  { %v328_v50 = vadd.f32 %v327_v47, %v303_v45 }
  0xbc   :  { %v933_v28 = vpop.f32.mrf.mxu2 }
  0xbd   :  { %v315_v40 = vmul.f32 %v933_v28, %v933_v28 }
  0xbe   :  { %v935_v29 = vpop.f32.mrf.mxu0 }
  0xbf   :  { %v304_v49 = vmul.f32 %v935_v29, %v935_v29  ;;  %v271_v51 = vadd.f32 %v270_v48, %v935_v29 }
  0xc1   :  { %v329_v53 = vadd.f32 %v328_v50, %v304_v49 }
  0xc4   :  { %v937_v30 = vpop.f32.mrf.mxu2 }
  0xc5   :  { %v316_v44 = vmul.f32 %v937_v30, %v937_v30 }
  0xc6   :  { %v939_v31 = vpop.f32.mrf.mxu0 }
  0xc7   :  { %v305_v52 = vmul.f32 %v939_v31, %v939_v31  ;;  %v272_v54 = vadd.f32 %v271_v51, %v939_v31 }
  0xc9   :  { %v330_v57 = vadd.f32 %v329_v53, %v305_v52 }
  0xcc   :  { %v941_v32 = vpop.f32.mrf.mxu2 }
  0xcd   :  { %v317_v48 = vmul.f32 %v941_v32, %v941_v32 }
  0xce   :  { %v943_v33 = vpop.f32.mrf.mxu0 }
  0xcf   :  { %v306_v55 = vmul.f32 %v943_v33, %v943_v33  ;;  %v273_v58 = vadd.f32 %v272_v54, %v943_v33 }
  0xd1   :  { %v331_v61 = vadd.f32 %v330_v57, %v306_v55 }
  0xd4   :  { %v945_v34 = vpop.f32.mrf.mxu2 }
  0xd5   :  { %v318_v51 = vmul.f32 %v945_v34, %v945_v34 }
  0xd6   :  { %v947_v35 = vpop.f32.mrf.mxu0 }
  0xd7   :  { %v307_v59 = vmul.f32 %v947_v35, %v947_v35  ;;  %v274_v62 = vadd.f32 %v273_v58, %v947_v35 }
  0xd9   :  { %v332_v0 = vadd.f32 %v331_v61, %v307_v59  ;;  %v795_v59 = vld [vmem:[%s1257_s5 + $0x38] sm:$0xff] }
  0xda   :  { %547 = vmatpush.bf16.msra.mxu1 %v795_v59  ;;  %804 = vmatpush.bf16.msra.mxu3 %v795_v59 }
  0xdc   :  { %v949_v36 = vpop.f32.mrf.mxu2 }
  0xdd   :  { %v319_v55 = vmul.f32 %v949_v36, %v949_v36 }
  0xde   :  { %v951_v37 = vpop.f32.mrf.mxu0 }
  0xdf   :  { %v308_v63 = vmul.f32 %v951_v37, %v951_v37  ;;  %v275_v1 = vadd.f32 %v274_v62, %v951_v37 }
  0xe1   :  { %v333_v3 = vadd.f32 %v332_v0, %v308_v63 }
  0xe4   :  { %v961_v42 = vpop.f32.mrf.mxu2 }
  0xe5   :  { %v320_v61 = vmul.f32 %v961_v42, %v961_v42 }
  0xe6   :  { %v966_v46 = vpop.f32.mrf.mxu0 }
  0xe7   :  { %v309_v2 = vmul.f32 %v966_v46, %v966_v46  ;;  %v276_v4 = vadd.f32 %v275_v1, %v966_v46 }
  0xe9   :  { %v334_v7 = vadd.f32 %v333_v3, %v309_v2  ;;  %v794_v3 = vld [vmem:[%s1257_s5 + $0x30] sm:$0xff] }
  0xea   :  { %548 = vmatpush.bf16.msra.mxu1 %v794_v3  ;;  %805 = vmatpush.bf16.msra.mxu3 %v794_v3 }
  0xec   :  { %v977_v56 = vpop.f32.mrf.mxu2 }
  0xed   :  { %v321_v0 = vmul.f32 %v977_v56, %v977_v56 }
  0xee   :  { %v982_v60 = vpop.f32.mrf.mxu0 }
  0xef   :  { %v310_v5 = vmul.f32 %v982_v60, %v982_v60  ;;  %v277_v8 = vadd.f32 %v276_v4, %v982_v60 }
  0xf1   :  { %v335_v10 = vadd.f32 %v334_v7, %v310_v5 }
  0xf4   :  { %v993_v6 = vpop.f32.mrf.mxu2 }
  0xf5   :  { %v322_v4 = vmul.f32 %v993_v6, %v993_v6 }
  0xf6   :  { %v996_v9 = vpop.f32.mrf.mxu0 }
  0xf7   :  { %v278_v11 = vadd.f32 %v277_v8, %v996_v9  ;;  %v311_v12 = vmul.f32 %v996_v9, %v996_v9 }
  0xf9   :  { %v279_v14 = vadd.f32 %v278_v11, %v921_v22  ;;  %v336_v15 = vadd.f32 %v335_v10, %v311_v12 }
  0xfb   :  { %v280_v17 = vadd.f32 %v279_v14, %v925_v24  ;;  %v337_v18 = vadd.f32 %v336_v15, %v312_v13  ;;  %v793_v13 = vld [vmem:[%s1257_s5 + $0x28] sm:$0xff] }
  0xfc   :  { %v1007_v19 = vpop.f32.mrf.mxu2  ;;  %549 = vmatpush.bf16.msra.mxu1 %v793_v13  ;;  %806 = vmatpush.bf16.msra.mxu3 %v793_v13 }
  0xfd   :  { %v281_v38 = vadd.f32 %v280_v17, %v929_v26  ;;  %v338_v39 = vadd.f32 %v337_v18, %v313_v16  ;;  %v323_v10 = vmul.f32 %v1007_v19, %v1007_v19 }
  0xff   :  { %v282_v41 = vadd.f32 %v281_v38, %v933_v28  ;;  %v339_v43 = vadd.f32 %v338_v39, %v314_v20  ;;  %v792_v38 = vld [vmem:[%s1257_s5 + $0x20] sm:$0xff] }
 0x100   :  { %550 = vmatpush.bf16.msra.mxu1 %v792_v38  ;;  %807 = vmatpush.bf16.msra.mxu3 %v792_v38 }
 0x101   :  { %v283_v45 = vadd.f32 %v282_v41, %v937_v30  ;;  %v340_v47 = vadd.f32 %v339_v43, %v315_v40 }
 0x103   :  { %v284_v49 = vadd.f32 %v283_v45, %v941_v32  ;;  %v341_v50 = vadd.f32 %v340_v47, %v316_v44  ;;  %v791_v44 = vld [vmem:[%s1257_s5 + $0x18] sm:$0xff] }
 0x104   :  { %v1024_v54 = vpop.f32.mrf.mxu2  ;;  %551 = vmatpush.bf16.msra.mxu1 %v791_v44  ;;  %808 = vmatpush.bf16.msra.mxu3 %v791_v44 }
 0x105   :  { %v342_v52 = vadd.f32 %v341_v50, %v317_v48  ;;  %v285_v53 = vadd.f32 %v284_v49, %v945_v34  ;;  %v324_v16 = vmul.f32 %v1024_v54, %v1024_v54  ;;  %v790_v50 = vld [vmem:[%s1257_s5 + $0x10] sm:$0xff] }
 0x107   :  { %v286_v57 = vadd.f32 %v285_v53, %v949_v36  ;;  %v343_v58 = vadd.f32 %v342_v52, %v318_v51 }
 0x108   :  { %552 = vmatpush.bf16.msra.mxu1 %v790_v50  ;;  %809 = vmatpush.bf16.msra.mxu3 %v790_v50 }
 0x109   :  { %v287_v62 = vadd.f32 %v286_v57, %v961_v42  ;;  %v344_v63 = vadd.f32 %v343_v58, %v319_v55  ;;  %v789_v57 = vld [vmem:[%s1257_s5 + $0x8] sm:$0xff] }
 0x10b   :  { %v288_v1 = vadd.f32 %v287_v62, %v977_v56  ;;  %v345_v2 = vadd.f32 %v344_v63, %v320_v61  ;;  %v788_v63 = vld [vmem:[%s1257_s5] sm:$0xff] }
 0x10c   :  { %v1047_v12 = vpop.f32.mrf.mxu2  ;;  %553 = vmatpush.bf16.msra.mxu1 %v789_v57  ;;  %810 = vmatpush.bf16.msra.mxu3 %v789_v57 }
 0x10d   :  { %v289_v5 = vadd.f32 %v288_v1, %v993_v6  ;;  %v346_v7 = vadd.f32 %v345_v2, %v321_v0  ;;  %v325_v20 = vmul.f32 %v1047_v12, %v1047_v12 }
 0x10f   :  { %v290_v8 = vadd.f32 %v289_v5, %v1007_v19  ;;  %v347_v11 = vadd.f32 %v346_v7, %v322_v4  ;;  %v812_v5 = vld [vmem:[%s1259_s2] ss:$0 sm:$0xff] }
 0x110   :  { %554 = vmatpush.bf16.msra.mxu1 %v788_v63  ;;  %811 = vmatpush.bf16.msra.mxu3 %v788_v63  ;;  %v1078_v13 = vadd.f32 %v812_v5, %v921_v22  ;;  %v361_v22 = vld [vmem:[%s1260_s3] sm:$0x1]  ;;  %v387_v38 = vadd.f32 %v812_v5, %v939_v31  ;;  %v391_v31 = vadd.f32 %v812_v5, %v966_v46 }
 0x111   :  { %v348_v14 = vadd.f32 %v347_v11, %v323_v10  ;;  %v291_v15 = vadd.f32 %v290_v8, %v1024_v54  ;;  %v382_v10 = vadd.f32 %v812_v5, %v919_v21  ;;  %v385_v21 = vadd.f32 %v812_v5, %v931_v27 }
 0x112   :  { %v388_v27 = vadd.f32 %v812_v5, %v943_v33  ;;  %v392_v33 = vadd.f32 %v812_v5, %v982_v60  ;;  %v406_v46 = vadd.f32 %v812_v5, %v1024_v54 }
 0x113   :  { %v349_v17 = vadd.f32 %v348_v14, %v324_v16  ;;  %v292_v18 = vadd.f32 %v291_v15, %v1047_v12  ;;  %v383_v14 = vadd.f32 %v812_v5, %v923_v23  ;;  %v1082_v15 = vadd.f32 %v812_v5, %v925_v24 }
 0x114   :  { %v384_v16 = vadd.f32 %v812_v5, %v927_v25  ;;  %v397_v23 = vadd.f32 %v812_v5, %v933_v28  ;;  %v386_v24 = vadd.f32 %v812_v5, %v935_v29  ;;  %v398_v25 = vadd.f32 %v812_v5, %v937_v30 }
 0x115   :  { %v293_v39 = vrot.slane %v292_v18, 4  ;;  %v350_v40 = vadd.f32 %v349_v17, %v325_v20  ;;  %v375_v17 = vld [vmem:[%s1259_s2] sm:$0x1]  ;;  %v390_v29 = vadd.f32 %v812_v5, %v951_v37  ;;  %v402_v30 = vadd.f32 %v812_v5, %v961_v42 }
 0x116   :  { %v393_v37 = vadd.f32 %v812_v5, %v996_v9  ;;  %v405_v42 = vadd.f32 %v812_v5, %v1007_v19 }
 0x117   :  { %v294_v41 = vadd.f32 %v293_v39, %v292_v18  ;;  %v351_v43 = vrot.slane %v350_v40, 4  ;;  %v396_v18 = vadd.f32 %v812_v5, %v929_v26  ;;  %v399_v26 = vadd.f32 %v812_v5, %v941_v32  ;;  %v374_v32 = vld [vmem:[%s1261_s4] sm:$0x1] }
 0x118   :  { %v400_v39 = vadd.f32 %v812_v5, %v945_v34 }
 0x119   :  { %v295_v45 = vrot.slane %v294_v41, 2  ;;  %v352_v47 = vadd.f32 %v351_v43, %v350_v40  ;;  %v401_v43 = vadd.f32 %v812_v5, %v949_v36 }
 0x11b   :  { %v296_v48 = vadd.f32 %v295_v45, %v294_v41  ;;  %v353_v49 = vrot.slane %v352_v47, 2  ;;  %v389_v41 = vadd.f32 %v812_v5, %v947_v35  ;;  %v403_v45 = vadd.f32 %v812_v5, %v977_v56 }
 0x11c   :  { %v407_v35 = vadd.f32 %v812_v5, %v1047_v12 }
 0x11d   :  { %v297_v51 = vrot.slane %v296_v48, 1  ;;  %v354_v52 = vadd.f32 %v353_v49, %v352_v47  ;;  %v404_v47 = vadd.f32 %v812_v5, %v993_v6 }
 0x11f   :  { %v298_v53 = vadd.f32 %v297_v51, %v296_v48  ;;  %v355_v55 = vrot.slane %v354_v52, 1 }
 0x121   :  { %v299_v58 = vmul.f32 0.005, %v298_v53  ;;  %v356_v59 = vadd.f32 %v355_v55, %v354_v52 }
 0x123   :  { %v357_v61 = vmul.f32 0.005, %v356_v59  ;;  %v358_v62 = vmul.f32 %v299_v58, %v299_v58  ;;  %v376_v44 = vadd.f32 %v375_v17, %v299_v58 }
 0x125   :  { %v359_v0 = vsub.f32 %v357_v61, %v358_v62 }
 0x127   :  { %v360_v1 = vmax.f32 %v359_v0, 0.0 }
 0x129   :  { %v362_v2 = vadd.f32 1e-05, %v360_v1 }
 0x12b   :  { %814 = vrsqrt.f32 %v362_v2  ;;  %vm369_vm1 = vweird.f32 %v362_v2 }
 0x131   :  { %v815_v3 = vpop.eup %814 }
 0x132   :  { %v364_v4 = vmul.f32 %v815_v3, %v362_v2  ;;  %vm370_vm0 = vweird.f32 %v815_v3 }
 0x133   :  { %vm371_vm2 = vmor %vm369_vm1, %vm370_vm0 }
 0x134   :  { %v365_v7 = vmul.f32 %v815_v3, %v364_v4 }
 0x136   :  { %v366_v8 = vmul.f32 0.5, %v365_v7 }
 0x138   :  { %v367_v11 = vsub.f32 1.5, %v366_v8 }
 0x13a   :  { %v368_v20 = vmul.f32 %v815_v3, %v367_v11 }
 0x13c   :  { %v372_v40 = vsel %vm371_vm2, %v815_v3, %v368_v20 }
 0x13d   :  { %v373_v28 = vmul.f32 %v372_v40, %v361_v22 }
 0x13f   :  { %v377_v34 = vmul.f32 %v376_v44, %v373_v28  ;;  %v1112_v36 = vperm.slane %v373_v28, 0 }
 0x141   :  { %v378_v56 = vsub.f32 %v374_v32, %v377_v34  ;;  %v436_v48 = vmul.f32 %v1112_v36, %v407_v35  ;;  %v411_v49 = vmul.f32 %v1112_v36, %v382_v10  ;;  %v412_v60 = vmul.f32 %v1112_v36, %v383_v14 }
 0x142   :  { %v425_v50 = vmul.f32 %v1112_v36, %v396_v18  ;;  %v426_v12 = vmul.f32 %v1112_v36, %v397_v23  ;;  %v413_v51 = vmul.f32 %v1112_v36, %v384_v16  ;;  %v414_v6 = vmul.f32 %v1112_v36, %v385_v21 }
 0x143   :  { %v438_v9 = vperm.slane %v378_v56, 0  ;;  %v427_v19 = vmul.f32 %v1112_v36, %v398_v25  ;;  %v428_v54 = vmul.f32 %v1112_v36, %v399_v26  ;;  %v415_v52 = vmul.f32 %v1112_v36, %v386_v24 }
 0x144   :  { %v416_v53 = vmul.f32 %v1112_v36, %v387_v38  ;;  %v429_v55 = vmul.f32 %v1112_v36, %v400_v39  ;;  %v430_v57 = vmul.f32 %v1112_v36, %v401_v43  ;;  %v417_v58 = vmul.f32 %v1112_v36, %v388_v27 }
 0x145   :  { %v440_v59 = vadd.f32 %v438_v9, %v411_v49  ;;  %v441_v61 = vadd.f32 %v438_v9, %v412_v60  ;;  %v454_v62 = vadd.f32 %v438_v9, %v425_v50  ;;  %v455_v63 = vadd.f32 %v438_v9, %v426_v12 }
 0x146   :  { %v442_v0 = vadd.f32 %v438_v9, %v413_v51  ;;  %v443_v1 = vadd.f32 %v438_v9, %v414_v6  ;;  %v456_v2 = vadd.f32 %v438_v9, %v427_v19  ;;  %v457_v3 = vadd.f32 %v438_v9, %v428_v54 }
 0x147   :  { %v466_v4 = vpack.c.bf16 %v441_v61, %v440_v59  ;;  %v473_v5 = vpack.c.bf16 %v455_v63, %v454_v62  ;;  %v444_v7 = vadd.f32 %v438_v9, %v415_v52  ;;  %v445_v8 = vadd.f32 %v438_v9, %v416_v53 }
 0x148   :  { %v467_v10 = vpack.c.bf16 %v443_v1, %v442_v0  ;;  %v474_v11 = vpack.c.bf16 %v457_v3, %v456_v2  ;;  %v458_v14 = vadd.f32 %v438_v9, %v429_v55  ;;  %v459_v16 = vadd.f32 %v438_v9, %v430_v57 }
 0x149   :  { %555 = vmatmul.bf16.vlgmr.msra.gmra.mxu1 %v466_v4  ;;  %590 = vmatmul.bf16.vlgmr.msra.gmra.mxu3 %v473_v5  ;;  %v468_v17 = vpack.c.bf16 %v445_v8, %v444_v7  ;;  %v418_v18 = vmul.f32 %v1112_v36, %v389_v41  ;;  %v446_v21 = vadd.f32 %v438_v9, %v417_v58 }
 0x14a   :  { %v475_v22 = vpack.c.bf16 %v459_v16, %v458_v14  ;;  %v431_v20 = vmul.f32 %v1112_v36, %v402_v30  ;;  %v432_v23 = vmul.f32 %v1112_v36, %v403_v45  ;;  %v419_v24 = vmul.f32 %v1112_v36, %v390_v29 }
 0x14b   :  { %v447_v25 = vadd.f32 %v438_v9, %v418_v18  ;;  %v420_v38 = vmul.f32 %v1112_v36, %v391_v31  ;;  %v433_v26 = vmul.f32 %v1112_v36, %v404_v47  ;;  %v434_v27 = vmul.f32 %v1112_v36, %v405_v42 }
 0x14c   :  { %v460_v39 = vadd.f32 %v438_v9, %v431_v20  ;;  %v461_v40 = vadd.f32 %v438_v9, %v432_v23  ;;  %v448_v43 = vadd.f32 %v438_v9, %v419_v24  ;;  %v421_v41 = vmul.f32 %v1112_v36, %v392_v33 }
 0x14d   :  { %v469_v28 = vpack.c.bf16 %v447_v25, %v446_v21  ;;  %v449_v44 = vadd.f32 %v438_v9, %v420_v38  ;;  %v462_v32 = vadd.f32 %v438_v9, %v433_v26  ;;  %v463_v30 = vadd.f32 %v438_v9, %v434_v27 }
 0x14e   :  { %v476_v34 = vpack.c.bf16 %v461_v40, %v460_v39  ;;  %v422_v45 = vmul.f32 %v1112_v36, %v393_v37  ;;  %v450_v29 = vadd.f32 %v438_v9, %v421_v41  ;;  %v435_v35 = vmul.f32 %v1112_v36, %v406_v46 }
 0x14f   :  { %v470_v31 = vpack.c.bf16 %v449_v44, %v448_v43  ;;  %v477_v56 = vpack.c.bf16 %v463_v30, %v462_v32  ;;  %v465_v47 = vadd.f32 %v438_v9, %v436_v48  ;;  %v423_v42 = vmul.f32 %v1112_v36, %v1078_v13  ;;  %v1149_v13 = vld [vmem:[%s1258_s6] ss:$0 sm:$0xff] }
 0x150   :  { %v451_v49 = vadd.f32 %v438_v9, %v422_v45  ;;  %v464_v60 = vadd.f32 %v438_v9, %v435_v35  ;;  %v424_v33 = vmul.f32 %v1112_v36, %v1082_v15 }
 0x151   :  { %v452_v50 = vadd.f32 %v438_v9, %v423_v42 }
 0x152   :  { %v471_v12 = vpack.c.bf16 %v451_v49, %v450_v29  ;;  %v478_v51 = vpack.c.bf16 %v465_v47, %v464_v60  ;;  %v453_v6 = vadd.f32 %v438_v9, %v424_v33 }
 0x154   :  { %v472_v19 = vpack.c.bf16 %v453_v6, %v452_v50 }
 0x159   :  { %560 = vmatmul.bf16.gmra.mxu1 %v467_v10  ;;  %595 = vmatmul.bf16.gmra.mxu3 %v474_v11 }
 0x169   :  { %565 = vmatmul.bf16.gmra.mxu1 %v468_v17  ;;  %600 = vmatmul.bf16.gmra.mxu3 %v475_v22 }
 0x179   :  { %570 = vmatmul.bf16.gmra.mxu1 %v469_v28  ;;  %605 = vmatmul.bf16.gmra.mxu3 %v476_v34 }
 0x189   :  { %575 = vmatmul.bf16.gmra.mxu1 %v470_v31  ;;  %610 = vmatmul.bf16.gmra.mxu3 %v477_v56 }
 0x199   :  { %580 = vmatmul.bf16.gmra.mxu1 %v471_v12  ;;  %615 = vmatmul.bf16.gmra.mxu3 %v478_v51 }
 0x1a9   :  { %585 = vmatmul.bf16.gmra.mxu1 %v472_v19 }
 0x1c6   :  { %v556_v15 = vpop.f32.mrf.mxu1 }
 0x1c7   :  { %v557_v36 = vadd.f32 %v1149_v13, %v556_v15 }
 0x1c9   :  { %621 = vst [vmem:[%s1262_s7] sm:$0xff] %v557_v36 }
 0x1cc   :  { %v591_v37 = vpop.f32.mrf.mxu3 }
 0x1cd   :  { %v592_v46 = vadd.f32 %v1149_v13, %v591_v37 }
 0x1ce   :  { %v558_v48 = vpop.f32.mrf.mxu1 }
 0x1cf   :  { %635 = vst [vmem:[%s1262_s7 + $0x70] sm:$0xff] %v592_v46  ;;  %v559_v9 = vadd.f32 %v1149_v13, %v558_v48 }
 0x1d1   :  { %622 = vst [vmem:[%s1262_s7 + $0x8] sm:$0xff] %v559_v9 }
 0x1d4   :  { %v593_v54 = vpop.f32.mrf.mxu3 }
 0x1d5   :  { %v594_v52 = vadd.f32 %v1149_v13, %v593_v54 }
 0x1d6   :  { %v561_v53 = vpop.f32.mrf.mxu1 }
 0x1d7   :  { %636 = vst [vmem:[%s1262_s7 + $0x78] sm:$0xff] %v594_v52  ;;  %v562_v55 = vadd.f32 %v1149_v13, %v561_v53 }
 0x1d9   :  { %623 = vst [vmem:[%s1262_s7 + $0x10] sm:$0xff] %v562_v55 }
 0x1dc   :  { %v596_v57 = vpop.f32.mrf.mxu3 }
 0x1dd   :  { %v597_v58 = vadd.f32 %v1149_v13, %v596_v57 }
 0x1de   :  { %v563_v59 = vpop.f32.mrf.mxu1 }
 0x1df   :  { %637 = vst [vmem:[%s1262_s7 + $0x80] sm:$0xff] %v597_v58  ;;  %v564_v61 = vadd.f32 %v1149_v13, %v563_v59 }
 0x1e1   :  { %624 = vst [vmem:[%s1262_s7 + $0x18] sm:$0xff] %v564_v61 }
 0x1e4   :  { %v598_v62 = vpop.f32.mrf.mxu3 }
 0x1e5   :  { %v599_v63 = vadd.f32 %v1149_v13, %v598_v62 }
 0x1e6   :  { %v566_v0 = vpop.f32.mrf.mxu1 }
 0x1e7   :  { %638 = vst [vmem:[%s1262_s7 + $0x88] sm:$0xff] %v599_v63  ;;  %v567_v1 = vadd.f32 %v1149_v13, %v566_v0 }
 0x1e9   :  { %625 = vst [vmem:[%s1262_s7 + $0x20] sm:$0xff] %v567_v1 }
 0x1ec   :  { %v601_v2 = vpop.f32.mrf.mxu3 }
 0x1ed   :  { %v602_v3 = vadd.f32 %v1149_v13, %v601_v2 }
 0x1ee   :  { %v568_v4 = vpop.f32.mrf.mxu1 }
 0x1ef   :  { %639 = vst [vmem:[%s1262_s7 + $0x90] sm:$0xff] %v602_v3  ;;  %v569_v5 = vadd.f32 %v1149_v13, %v568_v4 }
 0x1f1   :  { %626 = vst [vmem:[%s1262_s7 + $0x28] sm:$0xff] %v569_v5 }
 0x1f4   :  { %v603_v7 = vpop.f32.mrf.mxu3 }
 0x1f5   :  { %v604_v8 = vadd.f32 %v1149_v13, %v603_v7 }
 0x1f6   :  { %v571_v10 = vpop.f32.mrf.mxu1 }
 0x1f7   :  { %640 = vst [vmem:[%s1262_s7 + $0x98] sm:$0xff] %v604_v8  ;;  %v572_v11 = vadd.f32 %v1149_v13, %v571_v10 }
 0x1f9   :  { %627 = vst [vmem:[%s1262_s7 + $0x30] sm:$0xff] %v572_v11 }
 0x1fc   :  { %v606_v14 = vpop.f32.mrf.mxu3 }
 0x1fd   :  { %v607_v16 = vadd.f32 %v1149_v13, %v606_v14 }
 0x1fe   :  { %v573_v17 = vpop.f32.mrf.mxu1 }
 0x1ff   :  { %641 = vst [vmem:[%s1262_s7 + $0xa0] sm:$0xff] %v607_v16  ;;  %v574_v18 = vadd.f32 %v1149_v13, %v573_v17 }
 0x201   :  { %628 = vst [vmem:[%s1262_s7 + $0x38] sm:$0xff] %v574_v18 }
 0x204   :  { %v608_v21 = vpop.f32.mrf.mxu3 }
 0x205   :  { %v609_v22 = vadd.f32 %v1149_v13, %v608_v21 }
 0x206   :  { %v576_v20 = vpop.f32.mrf.mxu1 }
 0x207   :  { %642 = vst [vmem:[%s1262_s7 + $0xa8] sm:$0xff] %v609_v22  ;;  %v577_v23 = vadd.f32 %v1149_v13, %v576_v20 }
 0x209   :  { %629 = vst [vmem:[%s1262_s7 + $0x40] sm:$0xff] %v577_v23 }
 0x20c   :  { %v611_v24 = vpop.f32.mrf.mxu3 }
 0x20d   :  { %v612_v25 = vadd.f32 %v1149_v13, %v611_v24 }
 0x20e   :  { %v578_v38 = vpop.f32.mrf.mxu1 }
 0x20f   :  { %643 = vst [vmem:[%s1262_s7 + $0xb0] sm:$0xff] %v612_v25  ;;  %v579_v26 = vadd.f32 %v1149_v13, %v578_v38 }
 0x211   :  { %630 = vst [vmem:[%s1262_s7 + $0x48] sm:$0xff] %v579_v26 }
 0x214   :  { %v613_v27 = vpop.f32.mrf.mxu3 }
 0x215   :  { %v614_v39 = vadd.f32 %v1149_v13, %v613_v27 }
 0x216   :  { %v581_v40 = vpop.f32.mrf.mxu1 }
 0x217   :  { %644 = vst [vmem:[%s1262_s7 + $0xb8] sm:$0xff] %v614_v39  ;;  %v582_v43 = vadd.f32 %v1149_v13, %v581_v40 }
 0x219   :  { %631 = vst [vmem:[%s1262_s7 + $0x50] sm:$0xff] %v582_v43 }
 0x21c   :  { %v616_v41 = vpop.f32.mrf.mxu3 }
 0x21d   :  { %v617_v28 = vadd.f32 %v1149_v13, %v616_v41 }
 0x21e   :  { %v583_v44 = vpop.f32.mrf.mxu1 }
 0x21f   :  { %645 = vst [vmem:[%s1262_s7 + $0xc0] sm:$0xff] %v617_v28  ;;  %v584_v32 = vadd.f32 %v1149_v13, %v583_v44 }
 0x221   :  { %632 = vst [vmem:[%s1262_s7 + $0x58] sm:$0xff] %v584_v32 }
 0x224   :  { %v618_v30 = vpop.f32.mrf.mxu3 }
 0x225   :  { %v619_v34 = vadd.f32 %v1149_v13, %v618_v30 }
 0x226   :  { %v586_v45 = vpop.f32.mrf.mxu1 }
 0x227   :  { %646 = vst [vmem:[%s1262_s7 + $0xc8] sm:$0xff] %v619_v34  ;;  %v587_v29 = vadd.f32 %v1149_v13, %v586_v45 }
 0x229   :  { %633 = vst [vmem:[%s1262_s7 + $0x60] sm:$0xff] %v587_v29 }
 0x22e   :  { %v588_v35 = vpop.f32.mrf.mxu1 }
 0x22f   :  { %v589_v31 = vadd.f32 %v1149_v13, %v588_v35 }
 0x231   :  { %634 = vst [vmem:[%s1262_s7 + $0x68] sm:$0xff] %v589_v31 }

</bundles_post_ra>
